<compile_context>
chip_gen: v5e
topology: v5e:2x2
jax: 0.10.0
libtpu: 0.0.40
codegen_flags: <defaults>
</compile_context>

<pallas_src>
import functools
import math

import jax
import jax.numpy as jnp
from jax.experimental import pallas as pl
from jax.experimental.pallas import tpu as pltpu


def _round_up(x, m):
    return ((x + m - 1) // m) * m


_VMEM_LIMIT = 48 * 1024 * 1024   # safe headroom on v7x (64 MiB physical), plenty on v5e/v6e


# ----------------------------- tiled linear (matmul + bias [+ relu]) -----------------------------

def _matmul_kernel(x_ref, w_ref, b_ref, o_ref, acc_ref, *, relu):
    kk = pl.program_id(2)

    @pl.when(kk == 0)
    def _():
        acc_ref[...] = jnp.zeros_like(acc_ref)

    acc_ref[...] += jnp.dot(x_ref[...], w_ref[...], preferred_element_type=jnp.float32)

    @pl.when(kk == pl.num_programs(2) - 1)
    def _():
        y = acc_ref[...] + b_ref[...]
        if relu:
            y = jnp.maximum(y, 0.0)
        o_ref[...] = y


def linear_pallas(x2d, w, b, relu=False):
    """x2d: (M, K), w: (K, N), b: (N,) -> (M, N).  Tiled, pipelined, bias/ReLU fused."""
    M, K = x2d.shape
    _, N = w.shape

    # Tile sizes: rows multiples of 8, lane dims multiples of 128 (pad + slice back).
    tm = min(256, _round_up(M, 8))
    tn = min(256, _round_up(N, 128))
    tk = min(512, _round_up(K, 128))
    Mp, Kp, Np = _round_up(M, tm), _round_up(K, tk), _round_up(N, tn)

    xp = x2d if (Mp == M and Kp == K) else jnp.pad(x2d, ((0, Mp - M), (0, Kp - K)))
    wp = w if (Kp == K and Np == N) else jnp.pad(w, ((0, Kp - K), (0, Np - N)))
    bp = b if Np == N else jnp.pad(b, (0, Np - N))

    out = pl.pallas_call(
        functools.partial(_matmul_kernel, relu=relu),
        out_shape=jax.ShapeDtypeStruct((Mp, Np), jnp.float32),
        grid=(Mp // tm, Np // tn, Kp // tk),
        in_specs=[pl.BlockSpec((tm, tk), lambda i, j, kk: (i, kk)),
                  pl.BlockSpec((tk, tn), lambda i, j, kk: (kk, j)),
                  pl.BlockSpec((1, tn), lambda i, j, kk: (0, j))],
        out_specs=pl.BlockSpec((tm, tn), lambda i, j, kk: (i, j)),
        scratch_shapes=[pltpu.VMEM((tm, tn), jnp.float32)],
        compiler_params=pltpu.CompilerParams(
            dimension_semantics=("parallel", "parallel", "arbitrary"),
            vmem_limit_bytes=_VMEM_LIMIT),
    )(xp, wp, bp.reshape(1, Np))

    if Mp != M or Np != N:
        out = out[:M, :N]
    return out
# TODO(synk): on v6e/v7x the MXU inputs could be cast to bf16 (f32 accumulation) for
# ~2x throughput; kept f32 here to preserve the reference forward numerics exactly.


# ----------------------------- layernorm kernels (row-tiled, fused epilogues) -----------------------------

def _ln_kernel(x_ref, g_ref, b_ref, o_ref):
    x = x_ref[...]
    mu = jnp.mean(x, axis=-1, keepdims=True)
    var = jnp.mean(jnp.square(x - mu), axis=-1, keepdims=True)
    inv = jax.lax.rsqrt(var + 1e-5)          # PyTorch LayerNorm eps default
    o_ref[...] = (x - mu) * inv * g_ref[...] + b_ref[...]


def layernorm_pallas(x2d, gamma, beta):
    M, D = x2d.shape
    tr = min(256, _round_up(M, 8))
    Mp = _round_up(M, tr)
    xp = x2d if Mp == M else jnp.pad(x2d, ((0, Mp - M), (0, 0)))
    out = pl.pallas_call(
        _ln_kernel,
        out_shape=jax.ShapeDtypeStruct((Mp, D), jnp.float32),
        grid=(Mp // tr,),
        in_specs=[pl.BlockSpec((tr, D), lambda i: (i, 0)),
                  pl.BlockSpec((1, D), lambda i: (0, 0)),
                  pl.BlockSpec((1, D), lambda i: (0, 0))],
        out_specs=pl.BlockSpec((tr, D), lambda i: (i, 0)),
        compiler_params=pltpu.CompilerParams(dimension_semantics=("parallel",)),
    )(xp, gamma.reshape(1, D), beta.reshape(1, D))
    return out[:M] if Mp != M else out


def _add_ln_mask_kernel(x_ref, r_ref, m_ref, g_ref, b_ref, o_ref):
    # LayerNorm(x + residual) * non_pad_mask  — residual add + mask fused in.
    y = x_ref[...] + r_ref[...]
    mu = jnp.mean(y, axis=-1, keepdims=True)
    var = jnp.mean(jnp.square(y - mu), axis=-1, keepdims=True)
    inv = jax.lax.rsqrt(var + 1e-5)
    o_ref[...] = ((y - mu) * inv * g_ref[...] + b_ref[...]) * m_ref[...]


def add_layernorm_mask_pallas(x2d, resid2d, gamma, beta, mask_col):
    """mask_col: (M, 1) — 1.0 for valid frames, 0.0 for padding."""
    M, D = x2d.shape
    tr = min(256, _round_up(M, 8))
    Mp = _round_up(M, tr)
    if Mp != M:
        x2d = jnp.pad(x2d, ((0, Mp - M), (0, 0)))
        resid2d = jnp.pad(resid2d, ((0, Mp - M), (0, 0)))
        mask_col = jnp.pad(mask_col, ((0, Mp - M), (0, 0)))
    out = pl.pallas_call(
        _add_ln_mask_kernel,
        out_shape=jax.ShapeDtypeStruct((Mp, D), jnp.float32),
        grid=(Mp // tr,),
        in_specs=[pl.BlockSpec((tr, D), lambda i: (i, 0)),
                  pl.BlockSpec((tr, D), lambda i: (i, 0)),
                  pl.BlockSpec((tr, 1), lambda i: (i, 0)),
                  pl.BlockSpec((1, D), lambda i: (0, 0)),
                  pl.BlockSpec((1, D), lambda i: (0, 0))],
        out_specs=pl.BlockSpec((tr, D), lambda i: (i, 0)),
        compiler_params=pltpu.CompilerParams(dimension_semantics=("parallel",)),
    )(x2d, resid2d, mask_col, gamma.reshape(1, D), beta.reshape(1, D))
    return out[:M] if Mp != M else out


# ----------------------------- multi-head self-attention -----------------------------

def _mhsa_kernel(len_ref, q_ref, k_ref, v_ref, o_ref, *, n_head, d_k, d_v, scale):
    b = pl.program_id(0)
    T = q_ref.shape[1]
    valid_len = len_ref[b]
    # key-padding additive mask, built in-kernel (no dense HBM mask).
    col = jax.lax.broadcasted_iota(jnp.int32, (T, T), 1)
    mask_add = jnp.where(col < valid_len, 0.0, -1e9).astype(jnp.float32)

    q = q_ref[0]                                    # (T, n_head*d_k)
    k = k_ref[0]                                    # (T, n_head*d_k)
    v = v_ref[0]                                    # (T, n_head*d_v)
    outs = []
    for h in range(n_head):
        qh = q[:, h * d_k:(h + 1) * d_k]
        kh = k[:, h * d_k:(h + 1) * d_k]
        vh = v[:, h * d_v:(h + 1) * d_v]
        s = jnp.dot(qh, kh.T, preferred_element_type=jnp.float32) * scale + mask_add
        s = s - jnp.max(s, axis=-1, keepdims=True)
        p = jnp.exp(s)
        p = p * pl.reciprocal(jnp.sum(p, axis=-1, keepdims=True), approx=True)
        outs.append(jnp.dot(p, vh, preferred_element_type=jnp.float32))
    o_ref[0] = jnp.concatenate(outs, axis=-1)       # single lane-dense store
# TODO(synk): for very long T (>1k) this should switch to flash-style KV tiling with an
# online-softmax accumulator; full (T, T) scores are fine for typical utterance lengths.


def mhsa_pallas(q, k, v, input_lengths, n_head, d_k, d_v):
    """q,k: (N, T, n_head*d_k), v: (N, T, n_head*d_v); lengths prefetched to SMEM."""
    N, T, _ = q.shape
    Hdk, Hdv = n_head * d_k, n_head * d_v
    kern = functools.partial(_mhsa_kernel, n_head=n_head, d_k=d_k, d_v=d_v,
                             scale=1.0 / math.sqrt(d_k))
    return pl.pallas_call(
        kern,
        out_shape=jax.ShapeDtypeStruct((N, T, Hdv), jnp.float32),
        grid_spec=pltpu.PrefetchScalarGridSpec(
            num_scalar_prefetch=1,
            grid=(N,),
            in_specs=[pl.BlockSpec((1, T, Hdk), lambda b, lens: (b, 0, 0)),
                      pl.BlockSpec((1, T, Hdk), lambda b, lens: (b, 0, 0)),
                      pl.BlockSpec((1, T, Hdv), lambda b, lens: (b, 0, 0))],
            out_specs=pl.BlockSpec((1, T, Hdv), lambda b, lens: (b, 0, 0))),
        compiler_params=pltpu.CompilerParams(
            dimension_semantics=("parallel",),
            vmem_limit_bytes=_VMEM_LIMIT),
    )(input_lengths.astype(jnp.int32), q, k, v)


# ----------------------------- parameters -----------------------------

def _xavier_uniform(key, shape):
    fan_in, fan_out = shape
    bound = math.sqrt(6.0 / (fan_in + fan_out))
    return jax.random.uniform(key, shape, jnp.float32, -bound, bound)


def init_params(key, *, d_input, n_layers, n_head, d_k, d_v, d_model,
                d_inner, vocab_size):
    keys = iter(jax.random.split(key, 8 * n_layers + 8))
    z = lambda n: jnp.zeros((n,), jnp.float32)
    o = lambda n: jnp.ones((n,), jnp.float32)
    params = {
        "linear_in_w": _xavier_uniform(next(keys), (d_input, d_model)),
        "linear_in_b": z(d_model),
        "ln_in_g": o(d_model), "ln_in_b": z(d_model),
        "out_w": _xavier_uniform(next(keys), (d_model, vocab_size)),
        "out_b": z(vocab_size),
        "layers": [],
    }
    for _ in range(n_layers):
        # per-matrix xavier (matching the reference per-parameter init), then QKV fused.
        w_q = _xavier_uniform(next(keys), (d_model, n_head * d_k))
        w_k = _xavier_uniform(next(keys), (d_model, n_head * d_k))
        w_v = _xavier_uniform(next(keys), (d_model, n_head * d_v))
        lp = {
            "w_qkv": jnp.concatenate([w_q, w_k, w_v], axis=1),
            "b_qkv": z(n_head * (2 * d_k + d_v)),
            "w_o": _xavier_uniform(next(keys), (n_head * d_v, d_model)), "b_o": z(d_model),
            "ln_attn_g": o(d_model), "ln_attn_b": z(d_model),
            "ffn_w1": _xavier_uniform(next(keys), (d_model, d_inner)), "ffn_b1": z(d_inner),
            "ffn_w2": _xavier_uniform(next(keys), (d_inner, d_model)), "ffn_b2": z(d_model),
            "ln_ffn_g": o(d_model), "ln_ffn_b": z(d_model),
        }
        params["layers"].append(lp)
    return params


def positional_encoding(T, d_model):
    pos = jnp.arange(T, dtype=jnp.float32)[:, None]
    i = jnp.arange(d_model, dtype=jnp.float32)[None, :]
    angle = pos / jnp.power(10000.0, 2.0 * jnp.floor(i / 2.0) / d_model)
    pe = jnp.where((jnp.arange(d_model) % 2) == 0, jnp.sin(angle), jnp.cos(angle))
    return pe.astype(jnp.float32)                     # (T, d_model)


# ----------------------------- model forward -----------------------------

def encoder_layer(x, lp, input_lengths, non_pad_mask2d, n_head, d_k, d_v):
    N, T, d_model = x.shape
    Hdk, Hdv = n_head * d_k, n_head * d_v
    x2 = x.reshape(N * T, d_model)

    # --- multi-head self-attention (post-LN, residual, non-pad mask) ---
    residual = x2
    qkv = linear_pallas(x2, lp["w_qkv"], lp["b_qkv"])                 # fused Q|K|V projection
    q = qkv[:, :Hdk].reshape(N, T, Hdk)
    k = qkv[:, Hdk:2 * Hdk].reshape(N, T, Hdk)
    v = qkv[:, 2 * Hdk:].reshape(N, T, Hdv)

    ctx = mhsa_pallas(q, k, v, input_lengths, n_head, d_k, d_v)       # (N, T, H*d_v)
    attn_out = linear_pallas(ctx.reshape(N * T, Hdv), lp["w_o"], lp["b_o"])
    x2 = add_layernorm_mask_pallas(attn_out, residual,
                                   lp["ln_attn_g"], lp["ln_attn_b"], non_pad_mask2d)

    # --- position-wise FFN (post-LN, residual, non-pad mask) ---
    residual = x2
    h = linear_pallas(x2, lp["ffn_w1"], lp["ffn_b1"], relu=True)
    h = linear_pallas(h, lp["ffn_w2"], lp["ffn_b2"])
    x2 = add_layernorm_mask_pallas(h, residual,
                                   lp["ln_ffn_g"], lp["ln_ffn_b"], non_pad_mask2d)
    return x2.reshape(N, T, d_model)


def ctc_model_forward(params, padded_input, input_lengths, *, n_head, d_k, d_v):
    """padded_input: (N, Ti, D) f32; input_lengths: (N,) i32.
    Returns (logits (N, Ti, vocab), len_logits (N,))."""
    N, T, d_input = padded_input.shape
    d_model = params["linear_in_w"].shape[1]
    input_lengths = input_lengths.astype(jnp.int32)

    # non-pad mask (column vector per (n,t) row); attention mask is built in-kernel.
    t_idx = jnp.arange(T)
    valid = (t_idx[None, :] < input_lengths[:, None]).astype(jnp.float32)   # (N, T)
    non_pad_mask2d = valid.reshape(N * T, 1)

    # encoder front-end: Linear + LayerNorm + positional encoding (dropout = identity / eval)
    x2 = padded_input.reshape(N * T, d_input)
    h = linear_pallas(x2, params["linear_in_w"], params["linear_in_b"])
    h = layernorm_pallas(h, params["ln_in_g"], params["ln_in_b"]).reshape(N, T, d_model)
    h = h + positional_encoding(T, d_model)[None]

    for lp in params["layers"]:
        h = encoder_layer(h, lp, input_lengths, non_pad_mask2d, n_head, d_k, d_v)

    # CTC decoder: single linear projection to vocab; len_logits = input_lengths
    logits = linear_pallas(h.reshape(N * T, d_model), params["out_w"], params["out_b"])
    logits = logits.reshape(N, T, -1)
    return logits, input_lengths


# ----------------------------- main -----------------------------

if __name__ == "__main__":
    # small, forward-consistent shapes
    N, Ti, d_input = 2, 8, 16
    n_layers, n_head, d_k, d_v = 2, 2, 16, 16
    d_model, d_inner, vocab_size = 32, 64, 20

    key = jax.random.PRNGKey(0)
    k_param, k_inp = jax.random.split(key)

    params = init_params(k_param, d_input=d_input, n_layers=n_layers, n_head=n_head,
                         d_k=d_k, d_v=d_v, d_model=d_model, d_inner=d_inner,
                         vocab_size=vocab_size)

    padded_input = jax.random.normal(k_inp, (N, Ti, d_input), jnp.float32)
    input_lengths = jnp.array([Ti, Ti - 2], dtype=jnp.int32)

    fwd = jax.jit(functools.partial(ctc_model_forward, n_head=n_head, d_k=d_k, d_v=d_v))
    logits, len_logits = fwd(params, padded_input, input_lengths)
    jax.block_until_ready(logits)
    jax.block_until_ready(len_logits)

    assert logits.shape == (N, Ti, vocab_size)
    assert len_logits.shape == (N,)
    assert bool(jnp.all(jnp.isfinite(logits)))
    # TODO(synk): dropout is omitted (eval-mode forward); training-mode dropout has no
    # deterministic Pallas equivalent without threading PRNG state through every layer.
    print("KERNEL_OK")
</pallas_src>

<mosaic_0001>
module attributes {stable_mosaic.version = 11 : i64} {
  func.func @_matmul_kernel(%arg0: i32, %arg1: i32, %arg2: i32, %arg3: memref<16x128xf32, #tpu.memory_space<vmem>>, %arg4: memref<128x128xf32, #tpu.memory_space<vmem>>, %arg5: memref<1x128xf32, #tpu.memory_space<vmem>>, %arg6: memref<16x128xf32, #tpu.memory_space<vmem>>, %arg7: memref<16x128xf32, #tpu.memory_space<vmem>>) attributes {dimension_semantics = [#tpu.dimension_semantics<parallel>, #tpu.dimension_semantics<parallel>, #tpu.dimension_semantics<arbitrary>], iteration_bounds = array<i64: 1, 1, 1>, scalar_prefetch = 0 : i64, scratch_operands = 1 : i64, tpu.core_type = #tpu.core_type<tc>, window_params = [{transform_indices = @transform_0, window_bounds = array<i64: 16, 128>}, {transform_indices = @transform_1, window_bounds = array<i64: 128, 128>}, {transform_indices = @transform_2, window_bounds = array<i64: 1, 128>}, {transform_indices = @transform_3, window_bounds = array<i64: 16, 128>}]} {
    %c0_i32 = arith.constant 0 : i32
    %0 = arith.cmpi eq, %arg2, %c0_i32 : i32
    %1 = arith.extui %0 : i1 to i32
    %c0_i32_0 = arith.constant 0 : i32
    %2 = arith.cmpi ne, %1, %c0_i32_0 : i32
    scf.if %2 {
      %cst_10 = arith.constant 0.000000e+00 : f32
      %12 = vector.broadcast %cst_10 : f32 to vector<16x128xf32>
      %c0_11 = arith.constant 0 : index
      %c0_12 = arith.constant 0 : index
      %13 = vector.load %arg7[%c0_11, %c0_12] : memref<16x128xf32, #tpu.memory_space<vmem>>, vector<16x128xf32>
      tpu.vector_store %arg7[%c0_11, %c0_12], %12 {strides = array<i32>} : memref<16x128xf32, #tpu.memory_space<vmem>>, vector<16x128xf32>,
    } else {
    }
    %c0 = arith.constant 0 : index
    %c0_1 = arith.constant 0 : index
    %3 = vector.load %arg7[%c0, %c0_1] : memref<16x128xf32, #tpu.memory_space<vmem>>, vector<16x128xf32>
    %c0_2 = arith.constant 0 : index
    %c0_3 = arith.constant 0 : index
    %4 = vector.load %arg3[%c0_2, %c0_3] : memref<16x128xf32, #tpu.memory_space<vmem>>, vector<16x128xf32>
    %c0_4 = arith.constant 0 : index
    %c0_5 = arith.constant 0 : index
    %5 = vector.load %arg4[%c0_4, %c0_5] : memref<128x128xf32, #tpu.memory_space<vmem>>, vector<128x128xf32>
    %cst = arith.constant dense<0.000000e+00> : vector<16x128xf32>
    %6 = tpu.matmul %4, %5, %cst {dimension_numbers = #tpu.dot_dimension_numbers<[1], [0], [0], [1], [0, 0, 1, 1], [], []>} : vector<16x128xf32>, vector<128x128xf32>, vector<16x128xf32> -> vector<16x128xf32>
    %7 = arith.addf %3, %6 : vector<16x128xf32>
    %c0_6 = arith.constant 0 : index
    %c0_7 = arith.constant 0 : index
    %8 = vector.load %arg7[%c0_6, %c0_7] : memref<16x128xf32, #tpu.memory_space<vmem>>, vector<16x128xf32>
    tpu.vector_store %arg7[%c0_6, %c0_7], %7 {strides = array<i32>} : memref<16x128xf32, #tpu.memory_space<vmem>>, vector<16x128xf32>,
    %c0_i32_8 = arith.constant 0 : i32
    %9 = arith.cmpi eq, %arg2, %c0_i32_8 : i32
    %10 = arith.extui %9 : i1 to i32
    %c0_i32_9 = arith.constant 0 : i32
    %11 = arith.cmpi ne, %10, %c0_i32_9 : i32
    scf.if %11 {
      %c0_10 = arith.constant 0 : index
      %c0_11 = arith.constant 0 : index
      %12 = vector.load %arg7[%c0_10, %c0_11] : memref<16x128xf32, #tpu.memory_space<vmem>>, vector<16x128xf32>
      %c0_12 = arith.constant 0 : index
      %c0_13 = arith.constant 0 : index
      %13 = vector.load %arg5[%c0_12, %c0_13] : memref<1x128xf32, #tpu.memory_space<vmem>>, vector<1x128xf32>
      %14 = vector.broadcast %13 : vector<1x128xf32> to vector<16x128xf32>
      %15 = arith.addf %12, %14 : vector<16x128xf32>
      %c0_14 = arith.constant 0 : index
      %c0_15 = arith.constant 0 : index
      %16 = vector.load %arg6[%c0_14, %c0_15] : memref<16x128xf32, #tpu.memory_space<vmem>>, vector<16x128xf32>
      tpu.vector_store %arg6[%c0_14, %c0_15], %15 {strides = array<i32>} : memref<16x128xf32, #tpu.memory_space<vmem>>, vector<16x128xf32>,
    } else {
    }
    return
  }
  func.func @transform_0(%arg0: i32, %arg1: i32, %arg2: i32) -> (i32, i32) {
    %c0_i32 = arith.constant 0 : i32
    return %arg0, %arg2 : i32, i32
  }
  func.func @transform_1(%arg0: i32, %arg1: i32, %arg2: i32) -> (i32, i32) {
    %c0_i32 = arith.constant 0 : i32
    return %arg2, %arg1 : i32, i32
  }
  func.func @transform_2(%arg0: i32, %arg1: i32, %arg2: i32) -> (i32, i32) {
    %c0_i32 = arith.constant 0 : i32
    %c0_i32_0 = arith.constant 0 : i32
    return %c0_i32, %arg1 : i32, i32
  }
  func.func @transform_3(%arg0: i32, %arg1: i32, %arg2: i32) -> (i32, i32) {
    %c0_i32 = arith.constant 0 : i32
    return %arg0, %arg1 : i32, i32
  }
}

module attributes {stable_mosaic.version = 11 : i64} {
  func.func @_ln_kernel(%arg0: i32, %arg1: memref<16x32xf32, #tpu.memory_space<vmem>>, %arg2: memref<1x32xf32, #tpu.memory_space<vmem>>, %arg3: memref<1x32xf32, #tpu.memory_space<vmem>>, %arg4: memref<16x32xf32, #tpu.memory_space<vmem>>) attributes {dimension_semantics = [#tpu.dimension_semantics<parallel>], iteration_bounds = array<i64: 1>, scalar_prefetch = 0 : i64, scratch_operands = 0 : i64, tpu.core_type = #tpu.core_type<tc>, window_params = [{transform_indices = @transform_0, window_bounds = array<i64: 16, 32>}, {pipeline_mode = #tpu.pipeline_mode<synchronous>, transform_indices = @transform_1, window_bounds = array<i64: 1, 32>}, {pipeline_mode = #tpu.pipeline_mode<synchronous>, transform_indices = @transform_2, window_bounds = array<i64: 1, 32>}, {transform_indices = @transform_3, window_bounds = array<i64: 16, 32>}]} {
    %c0 = arith.constant 0 : index
    %c0_0 = arith.constant 0 : index
    %0 = vector.load %arg1[%c0, %c0_0] : memref<16x32xf32, #tpu.memory_space<vmem>>, vector<16x32xf32>
    %cst = arith.constant dense<0.000000e+00> : vector<16xf32>
    %1 = vector.multi_reduction <add>, %0, %cst [1] : vector<16x32xf32> to vector<16xf32>
    %2 = vector.shape_cast %1 : vector<16xf32> to vector<16x1xf32>
    %cst_1 = arith.constant 3.200000e+01 : f32
    %3 = vector.broadcast %cst_1 : f32 to vector<16x1xf32>
    %4 = arith.divf %2, %3 : vector<16x1xf32>
    %5 = vector.broadcast %4 : vector<16x1xf32> to vector<16x32xf32>
    %6 = arith.subf %0, %5 : vector<16x32xf32>
    %7 = arith.mulf %6, %6 : vector<16x32xf32>
    %cst_2 = arith.constant dense<0.000000e+00> : vector<16xf32>
    %8 = vector.multi_reduction <add>, %7, %cst_2 [1] : vector<16x32xf32> to vector<16xf32>
    %9 = vector.shape_cast %8 : vector<16xf32> to vector<16x1xf32>
    %cst_3 = arith.constant 3.200000e+01 : f32
    %10 = vector.broadcast %cst_3 : f32 to vector<16x1xf32>
    %11 = arith.divf %9, %10 : vector<16x1xf32>
    %cst_4 = arith.constant 9.99999974E-6 : f32
    %12 = vector.broadcast %cst_4 : f32 to vector<16x1xf32>
    %13 = arith.addf %11, %12 : vector<16x1xf32>
    %14 = math.rsqrt %13 : vector<16x1xf32>
    %15 = vector.broadcast %4 : vector<16x1xf32> to vector<16x32xf32>
    %16 = arith.subf %0, %15 : vector<16x32xf32>
    %17 = vector.broadcast %14 : vector<16x1xf32> to vector<16x32xf32>
    %18 = arith.mulf %16, %17 : vector<16x32xf32>
    %c0_5 = arith.constant 0 : index
    %c0_6 = arith.constant 0 : index
    %19 = vector.load %arg2[%c0_5, %c0_6] : memref<1x32xf32, #tpu.memory_space<vmem>>, vector<1x32xf32>
    %20 = vector.broadcast %19 : vector<1x32xf32> to vector<16x32xf32>
    %21 = arith.mulf %18, %20 : vector<16x32xf32>
    %c0_7 = arith.constant 0 : index
    %c0_8 = arith.constant 0 : index
    %22 = vector.load %arg3[%c0_7, %c0_8] : memref<1x32xf32, #tpu.memory_space<vmem>>, vector<1x32xf32>
    %23 = vector.broadcast %22 : vector<1x32xf32> to vector<16x32xf32>
    %24 = arith.addf %21, %23 : vector<16x32xf32>
    %c0_9 = arith.constant 0 : index
    %c0_10 = arith.constant 0 : index
    %25 = vector.load %arg4[%c0_9, %c0_10] : memref<16x32xf32, #tpu.memory_space<vmem>>, vector<16x32xf32>
    tpu.vector_store %arg4[%c0_9, %c0_10], %24 {strides = array<i32>} : memref<16x32xf32, #tpu.memory_space<vmem>>, vector<16x32xf32>,
    return
  }
  func.func @transform_0(%arg0: i32) -> (i32, i32) {
    %c0_i32 = arith.constant 0 : i32
    %c0_i32_0 = arith.constant 0 : i32
    return %arg0, %c0_i32 : i32, i32
  }
  func.func @transform_1(%arg0: i32) -> (i32, i32) {
    %c0_i32 = arith.constant 0 : i32
    %c0_i32_0 = arith.constant 0 : i32
    %c0_i32_1 = arith.constant 0 : i32
    return %c0_i32, %c0_i32_0 : i32, i32
  }
  func.func @transform_2(%arg0: i32) -> (i32, i32) {
    %c0_i32 = arith.constant 0 : i32
    %c0_i32_0 = arith.constant 0 : i32
    %c0_i32_1 = arith.constant 0 : i32
    return %c0_i32, %c0_i32_0 : i32, i32
  }
  func.func @transform_3(%arg0: i32) -> (i32, i32) {
    %c0_i32 = arith.constant 0 : i32
    %c0_i32_0 = arith.constant 0 : i32
    return %arg0, %c0_i32 : i32, i32
  }
}

module attributes {stable_mosaic.version = 11 : i64} {
  func.func @_mhsa_kernel(%arg0: i32, %arg1: memref<2xi32, #tpu.memory_space<smem>>, %arg2: memref<1x8x32xf32, #tpu.memory_space<vmem>>, %arg3: memref<1x8x32xf32, #tpu.memory_space<vmem>>, %arg4: memref<1x8x32xf32, #tpu.memory_space<vmem>>, %arg5: memref<1x8x32xf32, #tpu.memory_space<vmem>>) attributes {dimension_semantics = [#tpu.dimension_semantics<parallel>], iteration_bounds = array<i64: 2>, scalar_prefetch = 1 : i64, scratch_operands = 0 : i64, tpu.core_type = #tpu.core_type<tc>, window_params = [{transform_indices = @transform_0, window_bounds = array<i64: 1, 8, 32>}, {transform_indices = @transform_1, window_bounds = array<i64: 1, 8, 32>}, {transform_indices = @transform_2, window_bounds = array<i64: 1, 8, 32>}, {transform_indices = @transform_3, window_bounds = array<i64: 1, 8, 32>}]} {
    %0 = arith.index_cast %arg0 : i32 to index
    %1 = memref.load %arg1[%0] : memref<2xi32, #tpu.memory_space<smem>>
    %2 = tpu.iota {dimensions = array<i32: 1>} : vector<8x8xi32>
    %3 = vector.broadcast %1 : i32 to vector<8x8xi32>
    %4 = arith.cmpi slt, %2, %3 : vector<8x8xi32>
    %cst = arith.constant 0.000000e+00 : f32
    %cst_0 = arith.constant -1.000000e+09 : f32
    %5 = vector.broadcast %cst : f32 to vector<8x8xf32>
    %6 = vector.broadcast %cst_0 : f32 to vector<8x8xf32>
    %7 = arith.select %4, %5, %6 : vector<8x8xi1>, vector<8x8xf32>
    %c0 = arith.constant 0 : index
    %c0_1 = arith.constant 0 : index
    %c0_2 = arith.constant 0 : index
    %8 = vector.load %arg2[%c0, %c0_1, %c0_2] : memref<1x8x32xf32, #tpu.memory_space<vmem>>, vector<1x8x32xf32>
    %9 = vector.shape_cast %8 : vector<1x8x32xf32> to vector<8x32xf32>
    %c0_3 = arith.constant 0 : index
    %c0_4 = arith.constant 0 : index
    %c0_5 = arith.constant 0 : index
    %10 = vector.load %arg3[%c0_3, %c0_4, %c0_5] : memref<1x8x32xf32, #tpu.memory_space<vmem>>, vector<1x8x32xf32>
    %11 = vector.shape_cast %10 : vector<1x8x32xf32> to vector<8x32xf32>
    %c0_6 = arith.constant 0 : index
    %c0_7 = arith.constant 0 : index
    %c0_8 = arith.constant 0 : index
    %12 = vector.load %arg4[%c0_6, %c0_7, %c0_8] : memref<1x8x32xf32, #tpu.memory_space<vmem>>, vector<1x8x32xf32>
    %13 = vector.shape_cast %12 : vector<1x8x32xf32> to vector<8x32xf32>
    %14 = vector.extract_strided_slice %9 {offsets = [0, 0], sizes = [8, 16], strides = [1, 1]} : vector<8x32xf32> to vector<8x16xf32>
    %15 = vector.extract_strided_slice %11 {offsets = [0, 0], sizes = [8, 16], strides = [1, 1]} : vector<8x32xf32> to vector<8x16xf32>
    %16 = vector.extract_strided_slice %13 {offsets = [0, 0], sizes = [8, 16], strides = [1, 1]} : vector<8x32xf32> to vector<8x16xf32>
    %17 = tpu.transpose %15, [1, 0] : vector<8x16xf32> -> vector<16x8xf32>
    %cst_9 = arith.constant dense<0.000000e+00> : vector<8x8xf32>
    %18 = tpu.matmul %14, %17, %cst_9 {dimension_numbers = #tpu.dot_dimension_numbers<[1], [0], [0], [1], [0, 0, 1, 1], [], []>} : vector<8x16xf32>, vector<16x8xf32>, vector<8x8xf32> -> vector<8x8xf32>
    %cst_10 = arith.constant 2.500000e-01 : f32
    %19 = vector.broadcast %cst_10 : f32 to vector<8x8xf32>
    %20 = arith.mulf %18, %19 : vector<8x8xf32>
    %21 = arith.addf %20, %7 : vector<8x8xf32>
    %cst_11 = arith.constant dense<0xFF800000> : vector<8xf32>
    %22 = vector.multi_reduction <maximumf>, %21, %cst_11 [1] : vector<8x8xf32> to vector<8xf32>
    %23 = vector.shape_cast %22 : vector<8xf32> to vector<8x1xf32>
    %24 = vector.broadcast %23 : vector<8x1xf32> to vector<8x8xf32>
    %25 = arith.subf %21, %24 : vector<8x8xf32>
    %26 = math.exp %25 : vector<8x8xf32>
    %cst_12 = arith.constant dense<0.000000e+00> : vector<8xf32>
    %27 = vector.multi_reduction <add>, %26, %cst_12 [1] : vector<8x8xf32> to vector<8xf32>
    %28 = vector.shape_cast %27 : vector<8xf32> to vector<8x1xf32>
    %29 = tpu.reciprocal %28 {approx = true} : vector<8x1xf32> -> vector<8x1xf32>
    %30 = vector.broadcast %29 : vector<8x1xf32> to vector<8x8xf32>
    %31 = arith.mulf %26, %30 : vector<8x8xf32>
    %cst_13 = arith.constant dense<0.000000e+00> : vector<8x16xf32>
    %32 = tpu.matmul %31, %16, %cst_13 {dimension_numbers = #tpu.dot_dimension_numbers<[1], [0], [0], [1], [0, 0, 1, 1], [], []>} : vector<8x8xf32>, vector<8x16xf32>, vector<8x16xf32> -> vector<8x16xf32>
    %33 = vector.extract_strided_slice %9 {offsets = [0, 16], sizes = [8, 16], strides = [1, 1]} : vector<8x32xf32> to vector<8x16xf32>
    %34 = vector.extract_strided_slice %11 {offsets = [0, 16], sizes = [8, 16], strides = [1, 1]} : vector<8x32xf32> to vector<8x16xf32>
    %35 = vector.extract_strided_slice %13 {offsets = [0, 16], sizes = [8, 16], strides = [1, 1]} : vector<8x32xf32> to vector<8x16xf32>
    %36 = tpu.transpose %34, [1, 0] : vector<8x16xf32> -> vector<16x8xf32>
    %cst_14 = arith.constant dense<0.000000e+00> : vector<8x8xf32>
    %37 = tpu.matmul %33, %36, %cst_14 {dimension_numbers = #tpu.dot_dimension_numbers<[1], [0], [0], [1], [0, 0, 1, 1], [], []>} : vector<8x16xf32>, vector<16x8xf32>, vector<8x8xf32> -> vector<8x8xf32>
    %cst_15 = arith.constant 2.500000e-01 : f32
    %38 = vector.broadcast %cst_15 : f32 to vector<8x8xf32>
    %39 = arith.mulf %37, %38 : vector<8x8xf32>
    %40 = arith.addf %39, %7 : vector<8x8xf32>
    %cst_16 = arith.constant dense<0xFF800000> : vector<8xf32>
    %41 = vector.multi_reduction <maximumf>, %40, %cst_16 [1] : vector<8x8xf32> to vector<8xf32>
    %42 = vector.shape_cast %41 : vector<8xf32> to vector<8x1xf32>
    %43 = vector.broadcast %42 : vector<8x1xf32> to vector<8x8xf32>
    %44 = arith.subf %40, %43 : vector<8x8xf32>
    %45 = math.exp %44 : vector<8x8xf32>
    %cst_17 = arith.constant dense<0.000000e+00> : vector<8xf32>
    %46 = vector.multi_reduction <add>, %45, %cst_17 [1] : vector<8x8xf32> to vector<8xf32>
    %47 = vector.shape_cast %46 : vector<8xf32> to vector<8x1xf32>
    %48 = tpu.reciprocal %47 {approx = true} : vector<8x1xf32> -> vector<8x1xf32>
    %49 = vector.broadcast %48 : vector<8x1xf32> to vector<8x8xf32>
    %50 = arith.mulf %45, %49 : vector<8x8xf32>
    %cst_18 = arith.constant dense<0.000000e+00> : vector<8x16xf32>
    %51 = tpu.matmul %50, %35, %cst_18 {dimension_numbers = #tpu.dot_dimension_numbers<[1], [0], [0], [1], [0, 0, 1, 1], [], []>} : vector<8x8xf32>, vector<8x16xf32>, vector<8x16xf32> -> vector<8x16xf32>
    %52 = tpu.concatenate %32, %51 in 1 : vector<8x16xf32>, vector<8x16xf32> -> vector<8x32xf32>
    %c0_19 = arith.constant 0 : index
    %c0_20 = arith.constant 0 : index
    %c0_21 = arith.constant 0 : index
    %53 = vector.load %arg5[%c0_19, %c0_20, %c0_21] : memref<1x8x32xf32, #tpu.memory_space<vmem>>, vector<1x8x32xf32>
    %54 = vector.shape_cast %53 : vector<1x8x32xf32> to vector<8x32xf32>
    %55 = vector.shape_cast %52 : vector<8x32xf32> to vector<1x8x32xf32>
    tpu.vector_store %arg5[%c0_19, %c0_20, %c0_21], %55 {strides = array<i32>} : memref<1x8x32xf32, #tpu.memory_space<vmem>>, vector<1x8x32xf32>,
    return
  }
  func.func @transform_0(%arg0: i32, %arg1: memref<2xi32, #tpu.memory_space<smem>>) -> (i32, i32, i32) {
    %c0_i32 = arith.constant 0 : i32
    %c0_i32_0 = arith.constant 0 : i32
    %c0_i32_1 = arith.constant 0 : i32
    return %arg0, %c0_i32, %c0_i32_0 : i32, i32, i32
  }
  func.func @transform_1(%arg0: i32, %arg1: memref<2xi32, #tpu.memory_space<smem>>) -> (i32, i32, i32) {
    %c0_i32 = arith.constant 0 : i32
    %c0_i32_0 = arith.constant 0 : i32
    %c0_i32_1 = arith.constant 0 : i32
    return %arg0, %c0_i32, %c0_i32_0 : i32, i32, i32
  }
  func.func @transform_2(%arg0: i32, %arg1: memref<2xi32, #tpu.memory_space<smem>>) -> (i32, i32, i32) {
    %c0_i32 = arith.constant 0 : i32
    %c0_i32_0 = arith.constant 0 : i32
    %c0_i32_1 = arith.constant 0 : i32
    return %arg0, %c0_i32, %c0_i32_0 : i32, i32, i32
  }
  func.func @transform_3(%arg0: i32, %arg1: memref<2xi32, #tpu.memory_space<smem>>) -> (i32, i32, i32) {
    %c0_i32 = arith.constant 0 : i32
    %c0_i32_0 = arith.constant 0 : i32
    %c0_i32_1 = arith.constant 0 : i32
    return %arg0, %c0_i32, %c0_i32_0 : i32, i32, i32
  }
}

module attributes {stable_mosaic.version = 11 : i64} {
  func.func @_add_ln_mask_kernel(%arg0: i32, %arg1: memref<16x32xf32, #tpu.memory_space<vmem>>, %arg2: memref<16x32xf32, #tpu.memory_space<vmem>>, %arg3: memref<16x1xf32, #tpu.memory_space<vmem>>, %arg4: memref<1x32xf32, #tpu.memory_space<vmem>>, %arg5: memref<1x32xf32, #tpu.memory_space<vmem>>, %arg6: memref<16x32xf32, #tpu.memory_space<vmem>>) attributes {dimension_semantics = [#tpu.dimension_semantics<parallel>], iteration_bounds = array<i64: 1>, scalar_prefetch = 0 : i64, scratch_operands = 0 : i64, tpu.core_type = #tpu.core_type<tc>, window_params = [{transform_indices = @transform_0, window_bounds = array<i64: 16, 32>}, {transform_indices = @transform_1, window_bounds = array<i64: 16, 32>}, {transform_indices = @transform_2, window_bounds = array<i64: 16, 1>}, {pipeline_mode = #tpu.pipeline_mode<synchronous>, transform_indices = @transform_3, window_bounds = array<i64: 1, 32>}, {pipeline_mode = #tpu.pipeline_mode<synchronous>, transform_indices = @transform_4, window_bounds = array<i64: 1, 32>}, {transform_indices = @transform_5, window_bounds = array<i64: 16, 32>}]} {
    %c0 = arith.constant 0 : index
    %c0_0 = arith.constant 0 : index
    %0 = vector.load %arg1[%c0, %c0_0] : memref<16x32xf32, #tpu.memory_space<vmem>>, vector<16x32xf32>
    %c0_1 = arith.constant 0 : index
    %c0_2 = arith.constant 0 : index
    %1 = vector.load %arg2[%c0_1, %c0_2] : memref<16x32xf32, #tpu.memory_space<vmem>>, vector<16x32xf32>
    %2 = arith.addf %0, %1 : vector<16x32xf32>
    %cst = arith.constant dense<0.000000e+00> : vector<16xf32>
    %3 = vector.multi_reduction <add>, %2, %cst [1] : vector<16x32xf32> to vector<16xf32>
    %4 = vector.shape_cast %3 : vector<16xf32> to vector<16x1xf32>
    %cst_3 = arith.constant 3.200000e+01 : f32
    %5 = vector.broadcast %cst_3 : f32 to vector<16x1xf32>
    %6 = arith.divf %4, %5 : vector<16x1xf32>
    %7 = vector.broadcast %6 : vector<16x1xf32> to vector<16x32xf32>
    %8 = arith.subf %2, %7 : vector<16x32xf32>
    %9 = arith.mulf %8, %8 : vector<16x32xf32>
    %cst_4 = arith.constant dense<0.000000e+00> : vector<16xf32>
    %10 = vector.multi_reduction <add>, %9, %cst_4 [1] : vector<16x32xf32> to vector<16xf32>
    %11 = vector.shape_cast %10 : vector<16xf32> to vector<16x1xf32>
    %cst_5 = arith.constant 3.200000e+01 : f32
    %12 = vector.broadcast %cst_5 : f32 to vector<16x1xf32>
    %13 = arith.divf %11, %12 : vector<16x1xf32>
    %cst_6 = arith.constant 9.99999974E-6 : f32
    %14 = vector.broadcast %cst_6 : f32 to vector<16x1xf32>
    %15 = arith.addf %13, %14 : vector<16x1xf32>
    %16 = math.rsqrt %15 : vector<16x1xf32>
    %17 = vector.broadcast %6 : vector<16x1xf32> to vector<16x32xf32>
    %18 = arith.subf %2, %17 : vector<16x32xf32>
    %19 = vector.broadcast %16 : vector<16x1xf32> to vector<16x32xf32>
    %20 = arith.mulf %18, %19 : vector<16x32xf32>
    %c0_7 = arith.constant 0 : index
    %c0_8 = arith.constant 0 : index
    %21 = vector.load %arg4[%c0_7, %c0_8] : memref<1x32xf32, #tpu.memory_space<vmem>>, vector<1x32xf32>
    %22 = vector.broadcast %21 : vector<1x32xf32> to vector<16x32xf32>
    %23 = arith.mulf %20, %22 : vector<16x32xf32>
    %c0_9 = arith.constant 0 : index
    %c0_10 = arith.constant 0 : index
    %24 = vector.load %arg5[%c0_9, %c0_10] : memref<1x32xf32, #tpu.memory_space<vmem>>, vector<1x32xf32>
    %25 = vector.broadcast %24 : vector<1x32xf32> to vector<16x32xf32>
    %26 = arith.addf %23, %25 : vector<16x32xf32>
    %c0_11 = arith.constant 0 : index
    %c0_12 = arith.constant 0 : index
    %27 = vector.load %arg3[%c0_11, %c0_12] : memref<16x1xf32, #tpu.memory_space<vmem>>, vector<16x1xf32>
    %28 = vector.broadcast %27 : vector<16x1xf32> to vector<16x32xf32>
    %29 = arith.mulf %26, %28 : vector<16x32xf32>
    %c0_13 = arith.constant 0 : index
    %c0_14 = arith.constant 0 : index
    %30 = vector.load %arg6[%c0_13, %c0_14] : memref<16x32xf32, #tpu.memory_space<vmem>>, vector<16x32xf32>
    tpu.vector_store %arg6[%c0_13, %c0_14], %29 {strides = array<i32>} : memref<16x32xf32, #tpu.memory_space<vmem>>, vector<16x32xf32>,
    return
  }
  func.func @transform_0(%arg0: i32) -> (i32, i32) {
    %c0_i32 = arith.constant 0 : i32
    %c0_i32_0 = arith.constant 0 : i32
    return %arg0, %c0_i32 : i32, i32
  }
  func.func @transform_1(%arg0: i32) -> (i32, i32) {
    %c0_i32 = arith.constant 0 : i32
    %c0_i32_0 = arith.constant 0 : i32
    return %arg0, %c0_i32 : i32, i32
  }
  func.func @transform_2(%arg0: i32) -> (i32, i32) {
    %c0_i32 = arith.constant 0 : i32
    %c0_i32_0 = arith.constant 0 : i32
    return %arg0, %c0_i32 : i32, i32
  }
  func.func @transform_3(%arg0: i32) -> (i32, i32) {
    %c0_i32 = arith.constant 0 : i32
    %c0_i32_0 = arith.constant 0 : i32
    %c0_i32_1 = arith.constant 0 : i32
    return %c0_i32, %c0_i32_0 : i32, i32
  }
  func.func @transform_4(%arg0: i32) -> (i32, i32) {
    %c0_i32 = arith.constant 0 : i32
    %c0_i32_0 = arith.constant 0 : i32
    %c0_i32_1 = arith.constant 0 : i32
    return %c0_i32, %c0_i32_0 : i32, i32
  }
  func.func @transform_5(%arg0: i32) -> (i32, i32) {
    %c0_i32 = arith.constant 0 : i32
    %c0_i32_0 = arith.constant 0 : i32
    return %arg0, %c0_i32 : i32, i32
  }
}

module attributes {stable_mosaic.version = 11 : i64} {
  func.func @_matmul_kernel(%arg0: i32, %arg1: i32, %arg2: i32, %arg3: memref<16x128xf32, #tpu.memory_space<vmem>>, %arg4: memref<128x128xf32, #tpu.memory_space<vmem>>, %arg5: memref<1x128xf32, #tpu.memory_space<vmem>>, %arg6: memref<16x128xf32, #tpu.memory_space<vmem>>, %arg7: memref<16x128xf32, #tpu.memory_space<vmem>>) attributes {dimension_semantics = [#tpu.dimension_semantics<parallel>, #tpu.dimension_semantics<parallel>, #tpu.dimension_semantics<arbitrary>], iteration_bounds = array<i64: 1, 1, 1>, scalar_prefetch = 0 : i64, scratch_operands = 1 : i64, tpu.core_type = #tpu.core_type<tc>, window_params = [{transform_indices = @transform_0, window_bounds = array<i64: 16, 128>}, {transform_indices = @transform_1, window_bounds = array<i64: 128, 128>}, {transform_indices = @transform_2, window_bounds = array<i64: 1, 128>}, {transform_indices = @transform_3, window_bounds = array<i64: 16, 128>}]} {
    %c0_i32 = arith.constant 0 : i32
    %0 = arith.cmpi eq, %arg2, %c0_i32 : i32
    %1 = arith.extui %0 : i1 to i32
    %c0_i32_0 = arith.constant 0 : i32
    %2 = arith.cmpi ne, %1, %c0_i32_0 : i32
    scf.if %2 {
      %cst_10 = arith.constant 0.000000e+00 : f32
      %12 = vector.broadcast %cst_10 : f32 to vector<16x128xf32>
      %c0_11 = arith.constant 0 : index
      %c0_12 = arith.constant 0 : index
      %13 = vector.load %arg7[%c0_11, %c0_12] : memref<16x128xf32, #tpu.memory_space<vmem>>, vector<16x128xf32>
      tpu.vector_store %arg7[%c0_11, %c0_12], %12 {strides = array<i32>} : memref<16x128xf32, #tpu.memory_space<vmem>>, vector<16x128xf32>,
    } else {
    }
    %c0 = arith.constant 0 : index
    %c0_1 = arith.constant 0 : index
    %3 = vector.load %arg7[%c0, %c0_1] : memref<16x128xf32, #tpu.memory_space<vmem>>, vector<16x128xf32>
    %c0_2 = arith.constant 0 : index
    %c0_3 = arith.constant 0 : index
    %4 = vector.load %arg3[%c0_2, %c0_3] : memref<16x128xf32, #tpu.memory_space<vmem>>, vector<16x128xf32>
    %c0_4 = arith.constant 0 : index
    %c0_5 = arith.constant 0 : index
    %5 = vector.load %arg4[%c0_4, %c0_5] : memref<128x128xf32, #tpu.memory_space<vmem>>, vector<128x128xf32>
    %cst = arith.constant dense<0.000000e+00> : vector<16x128xf32>
    %6 = tpu.matmul %4, %5, %cst {dimension_numbers = #tpu.dot_dimension_numbers<[1], [0], [0], [1], [0, 0, 1, 1], [], []>} : vector<16x128xf32>, vector<128x128xf32>, vector<16x128xf32> -> vector<16x128xf32>
    %7 = arith.addf %3, %6 : vector<16x128xf32>
    %c0_6 = arith.constant 0 : index
    %c0_7 = arith.constant 0 : index
    %8 = vector.load %arg7[%c0_6, %c0_7] : memref<16x128xf32, #tpu.memory_space<vmem>>, vector<16x128xf32>
    tpu.vector_store %arg7[%c0_6, %c0_7], %7 {strides = array<i32>} : memref<16x128xf32, #tpu.memory_space<vmem>>, vector<16x128xf32>,
    %c0_i32_8 = arith.constant 0 : i32
    %9 = arith.cmpi eq, %arg2, %c0_i32_8 : i32
    %10 = arith.extui %9 : i1 to i32
    %c0_i32_9 = arith.constant 0 : i32
    %11 = arith.cmpi ne, %10, %c0_i32_9 : i32
    scf.if %11 {
      %c0_10 = arith.constant 0 : index
      %c0_11 = arith.constant 0 : index
      %12 = vector.load %arg7[%c0_10, %c0_11] : memref<16x128xf32, #tpu.memory_space<vmem>>, vector<16x128xf32>
      %c0_12 = arith.constant 0 : index
      %c0_13 = arith.constant 0 : index
      %13 = vector.load %arg5[%c0_12, %c0_13] : memref<1x128xf32, #tpu.memory_space<vmem>>, vector<1x128xf32>
      %14 = vector.broadcast %13 : vector<1x128xf32> to vector<16x128xf32>
      %15 = arith.addf %12, %14 : vector<16x128xf32>
      %cst_14 = arith.constant 0.000000e+00 : f32
      %16 = vector.broadcast %cst_14 : f32 to vector<16x128xf32>
      %17 = arith.maximumf %15, %16 : vector<16x128xf32>
      %c0_15 = arith.constant 0 : index
      %c0_16 = arith.constant 0 : index
      %18 = vector.load %arg6[%c0_15, %c0_16] : memref<16x128xf32, #tpu.memory_space<vmem>>, vector<16x128xf32>
      tpu.vector_store %arg6[%c0_15, %c0_16], %17 {strides = array<i32>} : memref<16x128xf32, #tpu.memory_space<vmem>>, vector<16x128xf32>,
    } else {
    }
    return
  }
  func.func @transform_0(%arg0: i32, %arg1: i32, %arg2: i32) -> (i32, i32) {
    %c0_i32 = arith.constant 0 : i32
    return %arg0, %arg2 : i32, i32
  }
  func.func @transform_1(%arg0: i32, %arg1: i32, %arg2: i32) -> (i32, i32) {
    %c0_i32 = arith.constant 0 : i32
    return %arg2, %arg1 : i32, i32
  }
  func.func @transform_2(%arg0: i32, %arg1: i32, %arg2: i32) -> (i32, i32) {
    %c0_i32 = arith.constant 0 : i32
    %c0_i32_0 = arith.constant 0 : i32
    return %c0_i32, %arg1 : i32, i32
  }
  func.func @transform_3(%arg0: i32, %arg1: i32, %arg2: i32) -> (i32, i32) {
    %c0_i32 = arith.constant 0 : i32
    return %arg0, %arg1 : i32, i32
  }
}

</mosaic_0001>

<bundles_post_ra>
// kernel: ctc_model_forward.17
= control target key start
LH: loop header
LB: loop body
LE: loop exit
PB: predicated region body
PF: predicated region fallthrough
CT: control target
= control target key end

     0   :  { %s184_s1 = inlined_call_operand.vmem [shape: f32[128,128], index: 1, kind: input, shape index: {}]   ;;  %s185_s2 = inlined_call_operand.vmem [shape: f32[1,128], index: 2, kind: input, shape index: {}]   ;;  %s186_s0 = inlined_call_operand.vmem [shape: f32[16,128], index: 0, kind: input, shape index: {}]   ;;  %s187_s3 = inlined_call_operand.vmem [shape: f32[16,128], index: 3, kind: output, shape index: {}]  }
   0x1   :  { %v39_v0 = vld [vmem:[%s184_s1 + $0x78] sm:$0xff]  ;;  %v38_v1 = vld [vmem:[%s184_s1 + $0x70] sm:$0xff]  ;;  %v37_v2 = vld [vmem:[%s184_s1 + $0x68] sm:$0xff] }
   0x2   :  { %40 = vmatpush.msra.mxu0 %v39_v0  ;;  %84 = vmatpush.msra.mxu1 %v39_v0  ;;  %v36_v3 = vld [vmem:[%s184_s1 + $0x60] sm:$0xff]  ;;  %v35_v4 = vld [vmem:[%s184_s1 + $0x58] sm:$0xff]  ;;  %v34_v5 = vld [vmem:[%s184_s1 + $0x50] sm:$0xff] }
   0x3   :  { %v33_v6 = vld [vmem:[%s184_s1 + $0x48] sm:$0xff]  ;;  %v32_v7 = vld [vmem:[%s184_s1 + $0x40] sm:$0xff]  ;;  %v31_v8 = vld [vmem:[%s184_s1 + $0x38] sm:$0xff] }
   0x4   :  { %41 = vmatpush.msra.mxu0 %v38_v1  ;;  %85 = vmatpush.msra.mxu1 %v38_v1  ;;  %v30_v9 = vld [vmem:[%s184_s1 + $0x30] sm:$0xff]  ;;  %v29_v10 = vld [vmem:[%s184_s1 + $0x28] sm:$0xff]  ;;  %v28_v11 = vld [vmem:[%s184_s1 + $0x20] sm:$0xff] }
   0x5   :  { %v27_v12 = vld [vmem:[%s184_s1 + $0x18] sm:$0xff]  ;;  %v26_v13 = vld [vmem:[%s184_s1 + $0x10] sm:$0xff]  ;;  %v25_v14 = vld [vmem:[%s184_s1 + $0x8] sm:$0xff] }
   0x6   :  { %42 = vmatpush.msra.mxu0 %v37_v2  ;;  %86 = vmatpush.msra.mxu1 %v37_v2  ;;  %v24_v15 = vld [vmem:[%s184_s1] sm:$0xff]  ;;  %v23_v17 = vld [vmem:[%s186_s0 + $0x8] sm:$0xff] }
   0x7   :  { %v22_v16 = vld [vmem:[%s186_s0] sm:$0xff] }
   0x8   :  { %43 = vmatpush.msra.mxu0 %v36_v3  ;;  %87 = vmatpush.msra.mxu1 %v36_v3  ;;  %v100_v18 = vld [vmem:[%s185_s2] ss:$0 sm:$0xff] }
   0xa   :  { %44 = vmatpush.msra.mxu0 %v35_v4  ;;  %88 = vmatpush.msra.mxu1 %v35_v4 }
   0xc   :  { %45 = vmatpush.msra.mxu0 %v34_v5  ;;  %89 = vmatpush.msra.mxu1 %v34_v5 }
   0xe   :  { %46 = vmatpush.msra.mxu0 %v33_v6  ;;  %90 = vmatpush.msra.mxu1 %v33_v6 }
  0x10   :  { %47 = vmatpush.msra.mxu0 %v32_v7  ;;  %91 = vmatpush.msra.mxu1 %v32_v7 }
  0x12   :  { %48 = vmatpush.msra.mxu0 %v31_v8  ;;  %92 = vmatpush.msra.mxu1 %v31_v8 }
  0x14   :  { %49 = vmatpush.msra.mxu0 %v30_v9  ;;  %93 = vmatpush.msra.mxu1 %v30_v9 }
  0x16   :  { %50 = vmatpush.msra.mxu0 %v29_v10  ;;  %94 = vmatpush.msra.mxu1 %v29_v10 }
  0x18   :  { %51 = vmatpush.msra.mxu0 %v28_v11  ;;  %95 = vmatpush.msra.mxu1 %v28_v11 }
  0x1a   :  { %52 = vmatpush.msra.mxu0 %v27_v12  ;;  %96 = vmatpush.msra.mxu1 %v27_v12 }
  0x1c   :  { %53 = vmatpush.msra.mxu0 %v26_v13  ;;  %97 = vmatpush.msra.mxu1 %v26_v13 }
  0x1e   :  { %54 = vmatpush.msra.mxu0 %v25_v14  ;;  %98 = vmatpush.msra.mxu1 %v25_v14 }
  0x20   :  { %55 = vmatpush.msra.mxu0 %v24_v15  ;;  %99 = vmatpush.msra.mxu1 %v24_v15 }
  0x21   :  { %56 = vmatmul.f32.vlgmr.msra.gmra.mxu0 %v22_v16  ;;  %59 = vmatmul.f32.vlgmr.msra.gmra.mxu1 %v23_v17 }
  0x9e   :  { %v57_v19 = vpop.f32.mrf.mxu0  ;;  %v60_v20 = vpop.f32.mrf.mxu1 }
  0x9f   :  { %v76_v21 = vadd.f32 %v100_v18, %v57_v19  ;;  %v77_v22 = vadd.f32 %v100_v18, %v60_v20 }
  0xa1   :  { %78 = vst [vmem:[%s187_s3] sm:$0xff] %v76_v21 }
  0xa2   :  { %79 = vst [vmem:[%s187_s3 + $0x8] sm:$0xff] %v77_v22 }

// kernel: ctc_model_forward.18
= control target key start
LH: loop header
LB: loop body
LE: loop exit
PB: predicated region body
PF: predicated region fallthrough
CT: control target
= control target key end

     0   :  { %vm16_vm0 = vcmask 261120   ;;  %v95_v4 = vmov 32.0   ;;  %s140_s0 = inlined_call_operand.vmem [shape: f32[16,32], index: 0, kind: input, shape index: {}]   ;;  %s141_s1 = inlined_call_operand.vmem [shape: f32[1,32], index: 1, kind: input, shape index: {}]   ;;  %s142_s2 = inlined_call_operand.vmem [shape: f32[1,32], index: 2, kind: input, shape index: {}]   ;;  %s143_s3 = inlined_call_operand.vmem [shape: f32[16,32], index: 3, kind: output, shape index: {}]  }
   0x1   :  { %v14_v0 = vld [vmem:[%s140_s0] sm:$0xff]  ;;  %v15_v2 = vld [vmem:[%s140_s0 + $0x8] sm:$0xff]  ;;  %89 = vrcp.f32 %v95_v4 }
   0x2   :  { %v17_v1 = vsel %vm16_vm0, %v14_v0, 0.0  ;;  %v20_v3 = vsel %vm16_vm0, %v15_v2, 0.0  ;;  %v87_v35 = vld [vmem:[%s141_s1] ss:$0 sm:$0xff] }
   0x3   :  { %18 = vadd.xlane.f32.xlu0 %v17_v1  ;;  %v88_v38 = vld [vmem:[%s142_s2] ss:$0 sm:$0xff] }
   0x7   :  { %v90_v5 = vpop.eup %89 }
   0x8   :  { %v24_v6 = vmul.f32 32.0, %v90_v5  ;;  %vm28_vm1 = vweird.f32 %v90_v5 }
   0xa   :  { %v25_v7 = vsub.f32 1.0, %v24_v6 }
   0xb   :  { %21 = vadd.xlane.f32.xlu0 %v20_v3 }
   0xc   :  { %v26_v8 = vmul.f32 %v90_v5, %v25_v7 }
   0xe   :  { %v27_v9 = vadd.f32 %v90_v5, %v26_v8 }
  0x10   :  { %v29_v10 = vsel %vm28_vm1, %v90_v5, %v27_v9 }
  0x76   :  { %v19_v11 = vpop.xlane.xlu0 %18 }
  0x77   :  { %v30_v12 = vmul.f32 %v29_v10, %v19_v11 }
  0x79   :  { %v32_v13 = vsub.f32 %v14_v0, %v30_v12 }
  0x7b   :  { %v34_v14 = vmul.f32 %v32_v13, %v32_v13 }
  0x7d   :  { %v36_v15 = vsel %vm16_vm0, %v34_v14, 0.0 }
  0x7e   :  { %37 = vadd.xlane.f32.xlu1 %v36_v15  ;;  %v22_v16 = vpop.xlane.xlu0 %21 }
  0x7f   :  { %v31_v17 = vmul.f32 %v29_v10, %v22_v16 }
  0x81   :  { %v33_v18 = vsub.f32 %v15_v2, %v31_v17 }
  0x83   :  { %v35_v19 = vmul.f32 %v33_v18, %v33_v18 }
  0x85   :  { %v39_v20 = vsel %vm16_vm0, %v35_v19, 0.0 }
  0x86   :  { %40 = vadd.xlane.f32.xlu1 %v39_v20 }
  0xf1   :  { %v38_v21 = vpop.xlane.xlu1 %37 }
  0xf2   :  { %v42_v22 = vmul.f32 %v38_v21, %v29_v10 }
  0xf4   :  { %v44_v23 = vadd.f32 1e-05, %v42_v22 }
  0xf6   :  { %91 = vrsqrt.f32 %v44_v23  ;;  %vm52_vm3 = vweird.f32 %v44_v23 }
  0xf9   :  { %v41_v24 = vpop.xlane.xlu1 %40 }
  0xfa   :  { %v43_v25 = vmul.f32 %v41_v24, %v29_v10 }
  0xfc   :  { %v92_v26 = vpop.eup %91  ;;  %v45_v27 = vadd.f32 1e-05, %v43_v25 }
  0xfd   :  { %v47_v28 = vmul.f32 %v92_v26, %v44_v23  ;;  %vm53_vm2 = vweird.f32 %v92_v26 }
  0xfe   :  { %93 = vrsqrt.f32 %v45_v27  ;;  %vm54_vm4 = vmor %vm52_vm3, %vm53_vm2  ;;  %vm62_vm6 = vweird.f32 %v45_v27 }
  0xff   :  { %v48_v29 = vmul.f32 %v92_v26, %v47_v28 }
 0x101   :  { %v49_v30 = vmul.f32 0.5, %v48_v29 }
 0x103   :  { %v50_v31 = vsub.f32 1.5, %v49_v30 }
 0x104   :  { %v94_v32 = vpop.eup %93 }
 0x105   :  { %v51_v33 = vmul.f32 %v92_v26, %v50_v31  ;;  %v57_v34 = vmul.f32 %v94_v32, %v45_v27  ;;  %vm63_vm5 = vweird.f32 %v94_v32 }
 0x106   :  { %vm64_vm7 = vmor %vm62_vm6, %vm63_vm5 }
 0x107   :  { %v55_v36 = vsel %vm54_vm4, %v92_v26, %v51_v33  ;;  %v58_v37 = vmul.f32 %v94_v32, %v57_v34 }
 0x108   :  { %v66_v39 = vmul.f32 %v55_v36, %v32_v13 }
 0x109   :  { %v59_v40 = vmul.f32 0.5, %v58_v37 }
 0x10a   :  { %v72_v41 = vmul.f32 %v87_v35, %v66_v39 }
 0x10b   :  { %v60_v42 = vsub.f32 1.5, %v59_v40 }
 0x10c   :  { %v78_v43 = vadd.f32 %v88_v38, %v72_v41 }
 0x10d   :  { %v61_v44 = vmul.f32 %v94_v32, %v60_v42 }
 0x10e   :  { %80 = vst.msk [vmem:[%s143_s3] sm:$0xff] %vm16_vm0, %v78_v43 }
 0x10f   :  { %v65_v45 = vsel %vm64_vm7, %v94_v32, %v61_v44 }
 0x110   :  { %v67_v46 = vmul.f32 %v65_v45, %v33_v18 }
 0x112   :  { %v73_v47 = vmul.f32 %v87_v35, %v67_v46 }
 0x114   :  { %v79_v48 = vadd.f32 %v88_v38, %v73_v47 }
 0x116   :  { %81 = vst.msk [vmem:[%s143_s3 + $0x8] sm:$0xff] %vm16_vm0, %v79_v48 }

// kernel: ctc_model_forward.20
= control target key start
LH: loop header
LB: loop body
LE: loop exit
PB: predicated region body
PF: predicated region fallthrough
CT: control target
= control target key end

     0   :  { %s493_s18 = smov [#allocation3]   ;;  %s568_s0 = inlined_call_operand.vmem [shape: s32[2], index: 0, kind: input, shape index: {}]   ;;  %s569_s1 = inlined_call_operand.vmem [shape: f32[2,8,32], index: 1, kind: input, shape index: {}]   ;;  %s570_s2 = inlined_call_operand.vmem [shape: f32[2,8,32], index: 2, kind: input, shape index: {}]   ;;  %s571_s3 = inlined_call_operand.vmem [shape: f32[2,8,32], index: 3, kind: input, shape index: {}]   ;;  %s572_s4 = inlined_call_operand.vmem [shape: f32[2,8,32], index: 4, kind: output, shape index: {}]  }
   0x1   :  { %s10_s17 = sshll.u32 %s568_s0, 4  ;;  %s11_s17 = int_to_ptr.vmem [resolvable:$true] %s10_s17 }
   0x2   :  { %13 = dma.vmem_to_smem %s11_s17, 16, %s493_s18, [#allocation2] }
   0x3   :  { %487 = dma.done.wait [#allocation2], 16 }
   0x4   :  { %488 = vsyncadd [#allocation2], 4294967280 }
   0x5   :  { %16 = sfence }
   0x6   :  { %s525_s19 = smov 0  }
   0x7 LB: > { %s434_s20 = sadd.s32 4294967295, %s491_s19   ;;  %p438_p0 = scmp.ge.s32.totalorder %s491_s19, 1  ;;  %s491_s19 = sphi %s525_s19, %s22_s19  }
   0x8   : > { %p163_p1 = scmp.lt.s32.totalorder %s491_s19, 3 }
   0xa   : > { %p164_p2 = pnand %p438_p0, %p163_p1 }
   0xb   : > { %p193_p3 = scmp.lt.s32.totalorder (!%p164_p2), %s434_s20, 1  ;;  %s494_s25 = smov (!%p164_p2), 112  }
   0xc   : > { %167 = sbr.rel (%p164_p2) target bundleno = 784 (0x310), region = 32  ;;  %s209_s29 = sld [smem:[#allocation3 + %s434_s20]] (!%p164_p2) }
   0xd   : > { %s496_s7 = smov (!%p164_p2), 16  }
  0x11   : > { %s194_s0 = scalar_select %p193_p3, %s434_s20, 1  ;;  %vm218_vm0 = vcmask 130048   ;;  %v210_v4 = vlaneseq  ;;  %v495_v8 = vmov -1e+09   ;;  %vm247_vm2 = vcmask 64512  }
  0x12   : > { %v212_v6 = vstv %s209_s29  ;;  %vm355_vm3 = vcmask 261120  }
  0x13   : > { %s533_s21 = sshll.u32 %s194_s0, 3  ;;  %v211_v5 = vand.u32 127, %v210_v4 }
  0x14   : > { %s200_s24 = scalar_lea.vmem %s570_s2, %s533_s21  ;;  %s196_s28 = scalar_lea.vmem %s569_s1, %s533_s21 }
  0x15   : > { %v216_v0 = vld [vmem:[%s200_s24] sm:$0xff]  ;;  %vm213_vm1 = vcmp.lt.s32.totalorder %v211_v5, %v212_v6  ;;  %s204_s6 = scalar_lea.vmem %s571_s3, %s533_s21  ;;  %s208_s10 = scalar_lea.vmem %s572_s4, %s533_s21 }
  0x16   : > { %284 = vrot.lane.b32.xlu0 %v216_v0, %s494_s25  ;;  %v215_v1 = vld [vmem:[%s196_s28] sm:$0xff]  ;;  %443 = vmatpush.xpose.msk.msra.mxu0 %vm218_vm0, %v216_v0  ;;  %v214_v9 = vsel %vm213_vm1, 0.0, %v495_v8 }
  0x17   : > { %v217_v17 = vld [vmem:[%s204_s6] sm:$0xff] }
  0x18   : > { %277 = vmatpush.msra.mxu1 %v217_v17 }
  0x19   : > { %444 = vmatmul.msk.f32.vlgmr.msra.gmra.mxu0 %vm218_vm0, %v215_v1 }
  0x1e   : > { %282 = vrot.lane.b32.xlu0 %v215_v1, %s494_s25 }
  0x88   : > { %v285_v2 = vpop.permute.xlu0 %284 }
  0x89   : > { %446 = vmatpush.xpose.msk.msra.mxu2 %vm218_vm0, %v285_v2 }
  0x90   : > { %v283_v3 = vpop.permute.xlu0 %282 }
  0x91   : > { %447 = vmatmul.msk.f32.vlgmr.msra.gmra.mxu2 %vm218_vm0, %v283_v3 }
  0x96   : > { %v242_v10 = vpop.f32.mrf.mxu0 }
  0x97   : > { %v245_v13 = vmul.f32 0.25, %v242_v10 }
  0x99   : > { %v246_v15 = vadd.f32 %v245_v13, %v214_v9 }
  0x9b   : > { %v248_v16 = vsel %vm247_vm2, %v246_v15, -inf }
 0x114   : > { %v307_v7 = vpop.f32.mrf.mxu2 }
 0x115   : > { %v310_v11 = vmul.f32 0.25, %v307_v7 }
 0x117   : > { %v311_v12 = vadd.f32 %v310_v11, %v214_v9 }
 0x119   : > { %v312_v14 = vsel %vm247_vm2, %v311_v12, -inf }
 0x11a   : > { %313 = vmax.xlane.f32.xlu1 %v312_v14 }
 0x122   : > { %249 = vmax.xlane.f32.xlu1 %v248_v16 }
 0x18d   : > { %v314_v18 = vpop.xlane.xlu1 %313 }
 0x18e   : > { %v315_v19 = vsub.f32 %v311_v12, %v314_v18 }
 0x190   : > { %v316_v20 = vmul.f32 1.442695, %v315_v19 }
 0x192   : > { %463 = vpow2.f32 %v316_v20 }
 0x195   : > { %v250_v21 = vpop.xlane.xlu1 %249 }
 0x196   : > { %v251_v22 = vsub.f32 %v246_v15, %v250_v21 }
 0x198   : > { %v464_v23 = vpop.eup %463  ;;  %v252_v24 = vmul.f32 1.442695, %v251_v22 }
 0x199   : > { %v318_v25 = vsel %vm247_vm2, %v464_v23, 0.0 }
 0x19a   : > { %465 = vpow2.f32 %v252_v24  ;;  %319 = vadd.xlane.f32.xlu2 %v318_v25 }
 0x1a0   : > { %v466_v26 = vpop.eup %465 }
 0x1a1   : > { %v254_v27 = vsel %vm247_vm2, %v466_v26, 0.0 }
 0x1a2   : > { %255 = vadd.xlane.f32.xlu0 %v254_v27 }
 0x1b2   : > { %324 = vrot.lane.b32.xlu2 %v217_v17, %s494_s25 }
 0x20d   : > { %v320_v28 = vpop.xlane.xlu2 %319 }
 0x20e   : > { %467 = vrcp.f32 %v320_v28 }
 0x214   : > { %v468_v29 = vpop.eup %467 }
 0x215   : > { %v325_v30 = vpop.permute.xlu2 %324  ;;  %v256_v31 = vpop.xlane.xlu0 %255  ;;  %v322_v32 = vmul.f32 %v468_v29, %v464_v23 }
 0x216   : > { %469 = vrcp.f32 %v256_v31  ;;  %345 = vmatpush.msra.mxu3 %v325_v30 }
 0x217   : > { %448 = vmatmul.msk.f32.vlgmr.msra.gmra.mxu3 %vm247_vm2, %v322_v32 }
 0x21c   : > { %v470_v33 = vpop.eup %469 }
 0x21d   : > { %v258_v34 = vmul.f32 %v470_v33, %v466_v26 }
 0x21f   : > { %445 = vmatmul.msk.f32.vlgmr.msra.gmra.mxu1 %vm247_vm2, %v258_v34 }
 0x29a   : > { %v347_v35 = vpop.f32.mrf.mxu3 }
 0x29b   : > { %351 = vrot.lane.b32.xlu1 %v347_v35, %s496_s7 }
 0x29c   : > { %v279_v36 = vpop.f32.mrf.mxu1 }
 0x30d   : > { %v352_v37 = vpop.permute.xlu1 %351 }
 0x30e   : > { %v354_v38 = vsel %vm218_vm0, %v279_v36, %v352_v37 }
 0x30f   : > { %356 = vst.msk [vmem:[%s208_s10] sm:$0xff] %vm355_vm3, %v354_v38 }
 0x310 PF: > { %s22_s19 = sadd.s32 1, %s491_s19  }
 0x311   : > { %p19_p4 = scmp.ge.s32.totalorder %s22_s19, 4  }
 0x313   :  { %21 = sbr.rel (!%p19_p4) target bundleno = 7 (0x7), region = 68 }

// kernel: ctc_model_forward.22
= control target key start
LH: loop header
LB: loop body
LE: loop exit
PB: predicated region body
PF: predicated region fallthrough
CT: control target
= control target key end

     0   :  { %vm26_vm0 = vcmask 261120   ;;  %v122_v8 = vmov 32.0   ;;  %v123_v12 = vmov 0   ;;  %s190_s0 = inlined_call_operand.vmem [shape: f32[16,32], index: 0, kind: input, shape index: {}]   ;;  %s191_s1 = inlined_call_operand.vmem [shape: f32[16,32], index: 1, kind: input, shape index: {}]   ;;  %s192_s2 = inlined_call_operand.vmem [shape: f32[16,1], index: 2, kind: input, shape index: {}]   ;;  %s193_s3 = inlined_call_operand.vmem [shape: f32[1,32], index: 3, kind: input, shape index: {}]   ;;  %s194_s4 = inlined_call_operand.vmem [shape: f32[1,32], index: 4, kind: input, shape index: {}]   ;;  %s195_s5 = inlined_call_operand.vmem [shape: f32[16,32], index: 5, kind: output, shape index: {}]  }
   0x1   :  { %v20_v0 = vld [vmem:[%s190_s0] sm:$0xff]  ;;  %v21_v3 = vld [vmem:[%s190_s0 + $0x8] sm:$0xff]  ;;  %116 = vrcp.f32 %v122_v8  ;;  %112 = vset.pattern.permute.xlu2 %v123_v12  ;;  %113 = vset.pattern.permute.xlu0 %v123_v12 }
   0x2   :  { %v22_v1 = vld [vmem:[%s191_s1] sm:$0xff]  ;;  %v23_v4 = vld [vmem:[%s191_s1 + $0x8] sm:$0xff] }
   0x3   :  { %v24_v2 = vadd.f32 %v22_v1, %v20_v0  ;;  %v25_v6 = vadd.f32 %v23_v4, %v21_v3  ;;  %v90_v11 = vld [vmem:[%s192_s2] sm:$0xff]  ;;  %v91_v15 = vld [vmem:[%s192_s2 + $0x8] sm:$0xff] }
   0x4   :  { %94 = vperm.xlu2 %112, %v90_v11   ;;  %v114_v42 = vld [vmem:[%s193_s3] ss:$0 sm:$0xff] }
   0x5   :  { %v27_v5 = vsel %vm26_vm0, %v24_v2, 0.0  ;;  %v30_v7 = vsel %vm26_vm0, %v25_v6, 0.0  ;;  %v115_v45 = vld [vmem:[%s194_s4] ss:$0 sm:$0xff] }
   0x6   :  { %28 = vadd.xlane.f32.xlu0 %v27_v5 }
   0x7   :  { %v117_v9 = vpop.eup %116 }
   0x8   :  { %v34_v10 = vmul.f32 32.0, %v117_v9  ;;  %vm38_vm1 = vweird.f32 %v117_v9 }
   0xa   :  { %v35_v13 = vsub.f32 1.0, %v34_v10 }
   0xc   :  { %v36_v14 = vmul.f32 %v117_v9, %v35_v13  ;;  %99 = vperm.xlu2 %112, %v91_v15  }
   0xe   :  { %31 = vadd.xlane.f32.xlu0 %v30_v7  ;;  %v37_v16 = vadd.f32 %v117_v9, %v36_v14 }
  0x10   :  { %v39_v17 = vsel %vm38_vm1, %v117_v9, %v37_v16 }
  0x5e   :  { %v95_v50 = vpop.permute.xlu2 %94 }
  0x66   :  { %v100_v58 = vpop.permute.xlu2 %99 }
  0x79   :  { %v29_v18 = vpop.xlane.xlu0 %28 }
  0x7a   :  { %v40_v19 = vmul.f32 %v39_v17, %v29_v18 }
  0x7c   :  { %v42_v20 = vsub.f32 %v24_v2, %v40_v19 }
  0x7e   :  { %v44_v21 = vmul.f32 %v42_v20, %v42_v20 }
  0x80   :  { %v46_v22 = vsel %vm26_vm0, %v44_v21, 0.0 }
  0x81   :  { %47 = vadd.xlane.f32.xlu1 %v46_v22  ;;  %v32_v23 = vpop.xlane.xlu0 %31 }
  0x82   :  { %v41_v24 = vmul.f32 %v39_v17, %v32_v23 }
  0x84   :  { %v43_v25 = vsub.f32 %v25_v6, %v41_v24 }
  0x86   :  { %v45_v26 = vmul.f32 %v43_v25, %v43_v25 }
  0x88   :  { %v49_v27 = vsel %vm26_vm0, %v45_v26, 0.0 }
  0x89   :  { %50 = vadd.xlane.f32.xlu1 %v49_v27 }
  0xf4   :  { %v48_v28 = vpop.xlane.xlu1 %47 }
  0xf5   :  { %v52_v29 = vmul.f32 %v48_v28, %v39_v17 }
  0xf7   :  { %v54_v30 = vadd.f32 1e-05, %v52_v29 }
  0xf9   :  { %118 = vrsqrt.f32 %v54_v30  ;;  %vm62_vm3 = vweird.f32 %v54_v30 }
  0xfc   :  { %v51_v31 = vpop.xlane.xlu1 %50 }
  0xfd   :  { %v53_v32 = vmul.f32 %v51_v31, %v39_v17 }
  0xff   :  { %v119_v33 = vpop.eup %118  ;;  %v55_v34 = vadd.f32 1e-05, %v53_v32 }
 0x100   :  { %v57_v35 = vmul.f32 %v119_v33, %v54_v30  ;;  %vm63_vm2 = vweird.f32 %v119_v33 }
 0x101   :  { %120 = vrsqrt.f32 %v55_v34  ;;  %vm64_vm4 = vmor %vm62_vm3, %vm63_vm2  ;;  %vm72_vm6 = vweird.f32 %v55_v34 }
 0x102   :  { %v58_v36 = vmul.f32 %v119_v33, %v57_v35 }
 0x104   :  { %v59_v37 = vmul.f32 0.5, %v58_v36 }
 0x106   :  { %v60_v38 = vsub.f32 1.5, %v59_v37 }
 0x107   :  { %v121_v39 = vpop.eup %120 }
 0x108   :  { %v61_v40 = vmul.f32 %v119_v33, %v60_v38  ;;  %v67_v41 = vmul.f32 %v121_v39, %v55_v34  ;;  %vm73_vm5 = vweird.f32 %v121_v39 }
 0x109   :  { %vm74_vm7 = vmor %vm72_vm6, %vm73_vm5 }
 0x10a   :  { %v68_v43 = vmul.f32 %v121_v39, %v67_v41  ;;  %v65_v44 = vsel %vm64_vm4, %v119_v33, %v61_v40 }
 0x10b   :  { %v76_v46 = vmul.f32 %v65_v44, %v42_v20 }
 0x10c   :  { %v69_v47 = vmul.f32 0.5, %v68_v43 }
 0x10d   :  { %v82_v48 = vmul.f32 %v114_v42, %v76_v46 }
 0x10e   :  { %v70_v49 = vsub.f32 1.5, %v69_v47 }
 0x10f   :  { %v88_v51 = vadd.f32 %v115_v45, %v82_v48 }
 0x110   :  { %v71_v52 = vmul.f32 %v121_v39, %v70_v49 }
 0x111   :  { %v102_v53 = vmul.f32 %v95_v50, %v88_v51 }
 0x112   :  { %v75_v54 = vsel %vm74_vm7, %v121_v39, %v71_v52 }
 0x113   :  { %104 = vst.msk [vmem:[%s195_s5] sm:$0xff] %vm26_vm0, %v102_v53  ;;  %v77_v55 = vmul.f32 %v75_v54, %v43_v25 }
 0x115   :  { %v83_v56 = vmul.f32 %v114_v42, %v77_v55 }
 0x117   :  { %v89_v57 = vadd.f32 %v115_v45, %v83_v56 }
 0x119   :  { %v103_v59 = vmul.f32 %v100_v58, %v89_v57 }
 0x11b   :  { %105 = vst.msk [vmem:[%s195_s5 + $0x8] sm:$0xff] %vm26_vm0, %v103_v59 }

// kernel: ctc_model_forward.23
= control target key start
LH: loop header
LB: loop body
LE: loop exit
PB: predicated region body
PF: predicated region fallthrough
CT: control target
= control target key end

     0   :  { %s186_s1 = inlined_call_operand.vmem [shape: f32[128,128], index: 1, kind: input, shape index: {}]   ;;  %s187_s2 = inlined_call_operand.vmem [shape: f32[1,128], index: 2, kind: input, shape index: {}]   ;;  %s188_s0 = inlined_call_operand.vmem [shape: f32[16,128], index: 0, kind: input, shape index: {}]   ;;  %s189_s3 = inlined_call_operand.vmem [shape: f32[16,128], index: 3, kind: output, shape index: {}]  }
   0x1   :  { %v39_v0 = vld [vmem:[%s186_s1 + $0x78] sm:$0xff]  ;;  %v38_v1 = vld [vmem:[%s186_s1 + $0x70] sm:$0xff]  ;;  %v37_v2 = vld [vmem:[%s186_s1 + $0x68] sm:$0xff] }
   0x2   :  { %40 = vmatpush.msra.mxu0 %v39_v0  ;;  %86 = vmatpush.msra.mxu1 %v39_v0  ;;  %v36_v3 = vld [vmem:[%s186_s1 + $0x60] sm:$0xff]  ;;  %v35_v4 = vld [vmem:[%s186_s1 + $0x58] sm:$0xff]  ;;  %v34_v5 = vld [vmem:[%s186_s1 + $0x50] sm:$0xff] }
   0x3   :  { %v33_v6 = vld [vmem:[%s186_s1 + $0x48] sm:$0xff]  ;;  %v32_v7 = vld [vmem:[%s186_s1 + $0x40] sm:$0xff]  ;;  %v31_v8 = vld [vmem:[%s186_s1 + $0x38] sm:$0xff] }
   0x4   :  { %41 = vmatpush.msra.mxu0 %v38_v1  ;;  %87 = vmatpush.msra.mxu1 %v38_v1  ;;  %v30_v9 = vld [vmem:[%s186_s1 + $0x30] sm:$0xff]  ;;  %v29_v10 = vld [vmem:[%s186_s1 + $0x28] sm:$0xff]  ;;  %v28_v11 = vld [vmem:[%s186_s1 + $0x20] sm:$0xff] }
   0x5   :  { %v27_v12 = vld [vmem:[%s186_s1 + $0x18] sm:$0xff]  ;;  %v26_v13 = vld [vmem:[%s186_s1 + $0x10] sm:$0xff]  ;;  %v25_v14 = vld [vmem:[%s186_s1 + $0x8] sm:$0xff] }
   0x6   :  { %42 = vmatpush.msra.mxu0 %v37_v2  ;;  %88 = vmatpush.msra.mxu1 %v37_v2  ;;  %v24_v15 = vld [vmem:[%s186_s1] sm:$0xff]  ;;  %v23_v17 = vld [vmem:[%s188_s0 + $0x8] sm:$0xff] }
   0x7   :  { %v22_v16 = vld [vmem:[%s188_s0] sm:$0xff] }
   0x8   :  { %43 = vmatpush.msra.mxu0 %v36_v3  ;;  %89 = vmatpush.msra.mxu1 %v36_v3  ;;  %v102_v18 = vld [vmem:[%s187_s2] ss:$0 sm:$0xff] }
   0xa   :  { %44 = vmatpush.msra.mxu0 %v35_v4  ;;  %90 = vmatpush.msra.mxu1 %v35_v4 }
   0xc   :  { %45 = vmatpush.msra.mxu0 %v34_v5  ;;  %91 = vmatpush.msra.mxu1 %v34_v5 }
   0xe   :  { %46 = vmatpush.msra.mxu0 %v33_v6  ;;  %92 = vmatpush.msra.mxu1 %v33_v6 }
  0x10   :  { %47 = vmatpush.msra.mxu0 %v32_v7  ;;  %93 = vmatpush.msra.mxu1 %v32_v7 }
  0x12   :  { %48 = vmatpush.msra.mxu0 %v31_v8  ;;  %94 = vmatpush.msra.mxu1 %v31_v8 }
  0x14   :  { %49 = vmatpush.msra.mxu0 %v30_v9  ;;  %95 = vmatpush.msra.mxu1 %v30_v9 }
  0x16   :  { %50 = vmatpush.msra.mxu0 %v29_v10  ;;  %96 = vmatpush.msra.mxu1 %v29_v10 }
  0x18   :  { %51 = vmatpush.msra.mxu0 %v28_v11  ;;  %97 = vmatpush.msra.mxu1 %v28_v11 }
  0x1a   :  { %52 = vmatpush.msra.mxu0 %v27_v12  ;;  %98 = vmatpush.msra.mxu1 %v27_v12 }
  0x1c   :  { %53 = vmatpush.msra.mxu0 %v26_v13  ;;  %99 = vmatpush.msra.mxu1 %v26_v13 }
  0x1e   :  { %54 = vmatpush.msra.mxu0 %v25_v14  ;;  %100 = vmatpush.msra.mxu1 %v25_v14 }
  0x20   :  { %55 = vmatpush.msra.mxu0 %v24_v15  ;;  %101 = vmatpush.msra.mxu1 %v24_v15 }
  0x21   :  { %56 = vmatmul.f32.vlgmr.msra.gmra.mxu0 %v22_v16  ;;  %59 = vmatmul.f32.vlgmr.msra.gmra.mxu1 %v23_v17 }
  0x9e   :  { %v57_v19 = vpop.f32.mrf.mxu0  ;;  %v60_v20 = vpop.f32.mrf.mxu1 }
  0x9f   :  { %v76_v21 = vadd.f32 %v102_v18, %v57_v19  ;;  %v77_v22 = vadd.f32 %v102_v18, %v60_v20 }
  0xa1   :  { %v78_v23 = vmax.f32 %v76_v21, 0.0  ;;  %v79_v24 = vmax.f32 %v77_v22, 0.0 }
  0xa3   :  { %80 = vst [vmem:[%s189_s3] sm:$0xff] %v78_v23 }
  0xa4   :  { %81 = vst [vmem:[%s189_s3 + $0x8] sm:$0xff] %v79_v24 }

</bundles_post_ra>
